<compile_context>
chip_gen: v6e
topology: v6e:2x2x1
jax: 0.10.0
libtpu: 0.0.40
codegen_flags: <defaults>
</compile_context>

<pallas_src>
import math
import jax
import jax.numpy as jnp
from jax import lax
from jax.experimental import pallas as pl
from jax.experimental.pallas import tpu as pltpu

_INV_SQRT2 = 1.0 / math.sqrt(2.0)


def _gelu_exact(h):
    # Exact erf-based GELU == torch.nn.GELU() default.
    # TODO(synk): on v5e the erf polynomial can rival matmul time; a
    # tanh-approx GELU (EUP slot) is cheaper if numerics allow.
    return 0.5 * h * (1.0 + lax.erf(h * _INV_SQRT2))


# --------------- Strategy A: weights VMEM-resident (preferred) --------------

def _mlp_resident_kernel(x_ref, w1_ref, w2_ref, o_ref):
    # c_fc slice: [tm, d_model] @ [d_model, d_hidden] -> f32 MXU accumulation
    h = jnp.dot(x_ref[...], w1_ref[...], preferred_element_type=jnp.float32)
    h = _gelu_exact(h)
    # c_proj: cast back to operand dtype so bf16 weights hit the bf16 MXU path
    o_ref[...] = jnp.dot(h.astype(w2_ref.dtype), w2_ref[...],
                         preferred_element_type=jnp.float32).astype(o_ref.dtype)


# --------------- Strategy B: hidden dim streamed (very large d_model) -------

def _mlp_stream_kernel(x_ref, w1_ref, w2_ref, o_ref, acc_ref):
    j = pl.program_id(1)  # hidden-dim reduction axis ("arbitrary", innermost)

    @pl.when(j == 0)
    def _():
        acc_ref[...] = jnp.zeros_like(acc_ref)

    h = jnp.dot(x_ref[...], w1_ref[...], preferred_element_type=jnp.float32)
    h = _gelu_exact(h)
    acc_ref[...] += jnp.dot(h.astype(w2_ref.dtype), w2_ref[...],
                            preferred_element_type=jnp.float32)

    @pl.when(j == pl.num_programs(1) - 1)
    def _():
        # dropout p=0.0 -> identity
        o_ref[...] = acc_ref[...].astype(o_ref.dtype)


# --------------------------------- wrapper ----------------------------------

def _vmem_cap_bytes():
    """Per-core VMEM budget the kernel is allowed to request."""
    try:
        cap = int(pltpu.get_tpu_info().vmem_capacity_bytes)
    except Exception:
        cap = 64 << 20  # conservative default (v7x per-TC size)
    # Leave headroom for Mosaic-internal scratch:
    #   v7x (64 MiB) -> 48 MiB;  v5e/v6e (128 MiB) -> 96 MiB (< 100 MiB cap).
    return min(cap * 3 // 4, 100 << 20)


def mlp_pallas(x, w1t, w2t, *, tm=None, th=None, force_stream=False):
    """MLP forward: GELU(x @ w1t) @ w2t  (bias=False, dropout p=0 -> identity).

    x:   [..., d_model]
    w1t: [d_model, d_hidden]  == c_fc.weight.T
    w2t: [d_hidden, d_model]  == c_proj.weight.T
    """
    d_model = x.shape[-1]
    d_hidden = w1t.shape[1]
    assert w1t.shape == (d_model, d_hidden)
    assert w2t.shape == (d_hidden, d_model)

    orig_shape = x.shape
    x2 = x.reshape(-1, d_model)
    N = x2.shape[0]

    ix = x2.dtype.itemsize
    iw = w1t.dtype.itemsize
    io = ix
    cap = _vmem_cap_bytes()

    def _fits(fp):
        return int(1.25 * fp) + (2 << 20) <= cap

    # Both weight BlockSpecs are double-buffered by the pipeline even though a
    # constant index_map means they are only DMA'd once -> account 2x.
    wbytes2 = 2 * 2 * d_model * d_hidden * iw

    # ---------------- choose strategy ----------------
    resident = not force_stream
    if resident:
        tm_a = tm if tm is not None else 256
        tm_a = min(tm_a, N)                      # small N: full-extent block
        fp_a = (2 * tm_a * d_model * ix          # x tile (double-buffered)
                + wbytes2                        # resident weights
                + 2 * tm_a * d_model * io        # out tile
                + 2 * tm_a * d_hidden * 4        # f32 hidden intermediate
                + tm_a * d_model * 4)            # f32 output temp
        resident = _fits(fp_a)

    if resident:
        grid = (pl.cdiv(N, tm_a),)
        cost = pl.CostEstimate(
            flops=4 * N * d_model * d_hidden,
            transcendentals=N * d_hidden,
            bytes_accessed=N * d_model * (ix + io) + 2 * d_model * d_hidden * iw)
        out = pl.pallas_call(
            _mlp_resident_kernel,
            out_shape=jax.ShapeDtypeStruct((N, d_model), x.dtype),
            grid_spec=pltpu.PrefetchScalarGridSpec(
                num_scalar_prefetch=0,
                grid=grid,
                in_specs=[
                    pl.BlockSpec((tm_a, d_model), lambda i: (i, 0)),
                    # constant index_map -> DMA'd once, stays VMEM-resident
                    pl.BlockSpec((d_model, d_hidden), lambda i: (0, 0)),
                    pl.BlockSpec((d_hidden, d_model), lambda i: (0, 0)),
                ],
                out_specs=pl.BlockSpec((tm_a, d_model), lambda i: (i, 0)),
            ),
            compiler_params=pltpu.CompilerParams(
                dimension_semantics=("parallel",),
                vmem_limit_bytes=min(cap, max(int(1.4 * fp_a) + (4 << 20),
                                              32 << 20)),
            ),
            cost_estimate=cost,
        )(x2, w1t, w2t)
        return out.reshape(orig_shape)

    # ---------------- streaming fallback ----------------
    tm_b = tm if tm is not None else 512         # larger tm amortizes weights
    tm_b = min(tm_b, N)

    def _fp_b(t):
        return (2 * tm_b * d_model * ix          # x tile
                + 4 * d_model * t * iw           # W1t / W2t slices (x2 buf)
                + 2 * tm_b * d_model * io        # out tile
                + tm_b * d_model * 4             # f32 accumulator scratch
                + 2 * tm_b * t * 4)              # f32 hidden intermediate

    if th is None:
        cands = [t for t in (4096, 2048, 1024, 512, 256, 128)
                 if t <= d_hidden and d_hidden % t == 0] or [d_hidden]
        th = next((t for t in cands if _fits(_fp_b(t))), cands[-1])
    assert d_hidden % th == 0
    n_hid = d_hidden // th
    fp_b = _fp_b(th)

    grid = (pl.cdiv(N, tm_b), n_hid)
    cost = pl.CostEstimate(
        flops=4 * N * d_model * d_hidden,
        transcendentals=N * d_hidden,
        bytes_accessed=(N * d_model * (ix + io)
                        + grid[0] * 2 * d_model * d_hidden * iw))
    out = pl.pallas_call(
        _mlp_stream_kernel,
        out_shape=jax.ShapeDtypeStruct((N, d_model), x.dtype),
        grid_spec=pltpu.PrefetchScalarGridSpec(
            num_scalar_prefetch=0,
            grid=grid,
            in_specs=[
                pl.BlockSpec((tm_b, d_model), lambda i, j: (i, 0)),  # x rows
                pl.BlockSpec((d_model, th), lambda i, j: (0, j)),    # W1t slice
                pl.BlockSpec((th, d_model), lambda i, j: (j, 0)),    # W2t slice
            ],
            out_specs=pl.BlockSpec((tm_b, d_model), lambda i, j: (i, 0)),
            scratch_shapes=[pltpu.VMEM((tm_b, d_model), jnp.float32)],
        ),
        compiler_params=pltpu.CompilerParams(
            dimension_semantics=("parallel", "arbitrary"),
            vmem_limit_bytes=min(cap, max(int(1.4 * fp_b) + (4 << 20),
                                          32 << 20)),
        ),
        cost_estimate=cost,
    )(x2, w1t, w2t)
    return out.reshape(orig_shape)


# --------------------------------- reference --------------------------------

def mlp_ref(x, w1t, w2t):
    xf = x.astype(jnp.float32)
    h = xf @ w1t.astype(jnp.float32)
    h = _gelu_exact(h)
    h = h.astype(w2t.dtype).astype(jnp.float32)  # mirror kernel cast before c_proj
    return (h @ w2t.astype(jnp.float32)).astype(x.dtype)


if __name__ == "__main__":
    # Small shapes consistent with the module (module default d_model=512;
    # use 128 so the output last dim is lane-dense) -> hidden = 512.
    d_model = 128
    d_hidden = 4 * d_model

    key = jax.random.PRNGKey(0)
    kx1, kx2, k1, k2 = jax.random.split(key, 4)

    # Deterministic init mimicking nn.Linear's uniform(-1/sqrt(fan_in), +) init.
    bound1 = 1.0 / math.sqrt(d_model)
    bound2 = 1.0 / math.sqrt(d_hidden)
    w1 = jax.random.uniform(k1, (d_hidden, d_model), jnp.float32, -bound1, bound1)  # c_fc.weight
    w2 = jax.random.uniform(k2, (d_model, d_hidden), jnp.float32, -bound2, bound2)  # c_proj.weight
    w1t = w1.T  # (d_model, 4*d_model)
    w2t = w2.T  # (4*d_model, d_model)

    ok = True

    # 1) f32, ragged N=20: resident-weight path, full-extent row block.
    x_a = jax.random.normal(kx1, (2, 10, d_model), jnp.float32)
    y_a = jax.block_until_ready(mlp_pallas(x_a, w1t, w2t))
    ref_a = mlp_ref(x_a, w1t, w2t)
    ok &= bool(jnp.allclose(y_a, ref_a, atol=1e-4, rtol=1e-4))

    # 2) f32, N=400 > tm=256: exercises the partial (edge-masked) last row tile.
    x_b = jax.random.normal(kx2, (2, 200, d_model), jnp.float32)
    y_b = jax.block_until_ready(mlp_pallas(x_b, w1t, w2t))
    ref_b = mlp_ref(x_b, w1t, w2t)
    ok &= bool(jnp.allclose(y_b, ref_b, atol=1e-4, rtol=1e-4))

    # 3) f32, forced weight-streaming path (hidden-reduction grid axis + acc).
    y_c = jax.block_until_ready(mlp_pallas(x_a, w1t, w2t, force_stream=True, th=128))
    ok &= bool(jnp.allclose(y_c, ref_a, atol=1e-4, rtol=1e-4))

    # 4) bf16 operands, f32 MXU accumulation (recommended production dtype).
    x_d = jax.random.normal(kx1, (2, 16, d_model), jnp.bfloat16)
    w1t_b, w2t_b = w1t.astype(jnp.bfloat16), w2t.astype(jnp.bfloat16)
    y_d = jax.block_until_ready(mlp_pallas(x_d, w1t_b, w2t_b))
    ref_d = mlp_ref(x_d, w1t_b, w2t_b)
    ok &= bool(jnp.allclose(y_d.astype(jnp.float32), ref_d.astype(jnp.float32),
                            atol=2e-2, rtol=2e-2))

    assert ok, "mismatch vs reference"
    print("KERNEL_OK")
</pallas_src>

<mosaic_0001>
module attributes {stable_mosaic.version = 11 : i64} {
  func.func @_mlp_resident_kernel(%arg0: i32, %arg1: memref<20x128xf32, #tpu.memory_space<vmem>>, %arg2: memref<128x512xf32, #tpu.memory_space<vmem>>, %arg3: memref<512x128xf32, #tpu.memory_space<vmem>>, %arg4: memref<20x128xf32, #tpu.memory_space<vmem>>) attributes {dimension_semantics = [#tpu.dimension_semantics<parallel>], iteration_bounds = array<i64: 1>, scalar_prefetch = 0 : i64, scratch_operands = 0 : i64, tpu.core_type = #tpu.core_type<tc>, window_params = [{transform_indices = @transform_0, window_bounds = array<i64: 20, 128>}, {pipeline_mode = #tpu.pipeline_mode<synchronous>, transform_indices = @transform_1, window_bounds = array<i64: 128, 512>}, {pipeline_mode = #tpu.pipeline_mode<synchronous>, transform_indices = @transform_2, window_bounds = array<i64: 512, 128>}, {transform_indices = @transform_3, window_bounds = array<i64: 20, 128>}]} {
    %c0 = arith.constant 0 : index
    %c0_0 = arith.constant 0 : index
    %0 = vector.load %arg1[%c0, %c0_0] : memref<20x128xf32, #tpu.memory_space<vmem>>, vector<20x128xf32>
    %c0_1 = arith.constant 0 : index
    %c0_2 = arith.constant 0 : index
    %1 = vector.load %arg2[%c0_1, %c0_2] : memref<128x512xf32, #tpu.memory_space<vmem>>, vector<128x512xf32>
    %cst = arith.constant dense<0.000000e+00> : vector<20x512xf32>
    %2 = tpu.matmul %0, %1, %cst {dimension_numbers = #tpu.dot_dimension_numbers<[1], [0], [0], [1], [0, 0, 1, 1], [], []>} : vector<20x128xf32>, vector<128x512xf32>, vector<20x512xf32> -> vector<20x512xf32>
    %cst_3 = arith.constant 5.000000e-01 : f32
    %3 = vector.broadcast %cst_3 : f32 to vector<20x512xf32>
    %4 = arith.mulf %3, %2 : vector<20x512xf32>
    %cst_4 = arith.constant 0.707106769 : f32
    %5 = vector.broadcast %cst_4 : f32 to vector<20x512xf32>
    %6 = arith.mulf %2, %5 : vector<20x512xf32>
    %7 = math.erf %6 : vector<20x512xf32>
    %cst_5 = arith.constant 1.000000e+00 : f32
    %8 = vector.broadcast %cst_5 : f32 to vector<20x512xf32>
    %9 = arith.addf %8, %7 : vector<20x512xf32>
    %10 = arith.mulf %4, %9 : vector<20x512xf32>
    %c0_6 = arith.constant 0 : index
    %c0_7 = arith.constant 0 : index
    %11 = vector.load %arg3[%c0_6, %c0_7] : memref<512x128xf32, #tpu.memory_space<vmem>>, vector<512x128xf32>
    %cst_8 = arith.constant dense<0.000000e+00> : vector<20x128xf32>
    %12 = tpu.matmul %10, %11, %cst_8 {dimension_numbers = #tpu.dot_dimension_numbers<[1], [0], [0], [1], [0, 0, 1, 1], [], []>} : vector<20x512xf32>, vector<512x128xf32>, vector<20x128xf32> -> vector<20x128xf32>
    %c0_9 = arith.constant 0 : index
    %c0_10 = arith.constant 0 : index
    %13 = vector.load %arg4[%c0_9, %c0_10] : memref<20x128xf32, #tpu.memory_space<vmem>>, vector<20x128xf32>
    tpu.vector_store %arg4[%c0_9, %c0_10], %12 {strides = array<i32>} : memref<20x128xf32, #tpu.memory_space<vmem>>, vector<20x128xf32>,
    return
  }
  func.func @transform_0(%arg0: i32) -> (i32, i32) {
    %c0_i32 = arith.constant 0 : i32
    %c0_i32_0 = arith.constant 0 : i32
    return %arg0, %c0_i32 : i32, i32
  }
  func.func @transform_1(%arg0: i32) -> (i32, i32) {
    %c0_i32 = arith.constant 0 : i32
    %c0_i32_0 = arith.constant 0 : i32
    %c0_i32_1 = arith.constant 0 : i32
    return %c0_i32, %c0_i32_0 : i32, i32
  }
  func.func @transform_2(%arg0: i32) -> (i32, i32) {
    %c0_i32 = arith.constant 0 : i32
    %c0_i32_0 = arith.constant 0 : i32
    %c0_i32_1 = arith.constant 0 : i32
    return %c0_i32, %c0_i32_0 : i32, i32
  }
  func.func @transform_3(%arg0: i32) -> (i32, i32) {
    %c0_i32 = arith.constant 0 : i32
    %c0_i32_0 = arith.constant 0 : i32
    return %arg0, %c0_i32 : i32, i32
  }
}

</mosaic_0001>

<bundles_post_ra>
// kernel: tpu_custom_call.1
= control target key start
LH: loop header
LB: loop body
LE: loop exit
PB: predicated region body
PF: predicated region fallthrough
CT: control target
= control target key end

     0   :  { %8 = vsyncpa [#allocation3], 0  ;;  %s851_s0 = inlined_call_operand.hbm [shape: f32[20,128], index: 0, kind: input, shape index: {}]   ;;  %s852_s1 = inlined_call_operand.hbm [shape: f32[128,512], index: 1, kind: input, shape index: {}]   ;;  %s853_s2 = inlined_call_operand.hbm [shape: f32[512,128], index: 2, kind: input, shape index: {}]   ;;  %s854_s3 = inlined_call_operand.hbm [shape: f32[20,128], index: 3, kind: output, shape index: {}]  }
   0x1   :  { %9 = vsyncpa [#allocation6], 0 }
   0x2   :  { %10 = vsyncpa [#allocation4], 0  ;;  %s795_s12 = smov [#allocation5]  }
   0x3   :  { %s28_s13 = sshll.u32 %s795_s12, 4  ;;  %s29_s13 = int_to_ptr.vmem [resolvable:$true] %s28_s13 }
   0x4   :  { %s717_s14 = scalar_lea.vmem %s29_s13, 8192  ;;  %p722_p1 = scmp.lt.s32.totalorder %s29_s13, %s29_s13 }
   0x5   :  { %p718_p0 = scmp.ne.s32.totalorder %s29_s13, %s717_s14  ;;  %p723_p2 = scmp.lt.s32.totalorder %s717_s14, %s717_s14 }
   0x7   :  { %p724_p3 = por %p723_p2, %p722_p1 }
   0x9   :  { %p725_p4 = pnand %p724_p3, %p718_p0 }
   0xb   :  { %728 = shalt.err (!%p725_p4)
}
   0xc   :  { %s796_s15 = smov 512   ;;  %s797_s16 = smov 32  }
   0xd   :  { %34 = dma.hbm_to_vmem [thread:$0]  %s852_s1, 8192, %s29_s13, [#allocation6], %s796_s15, %s796_s15, %s797_s16  }
   0xe   :  { %s798_s19 = smov [#allocation2]  }
   0xf   :  { %s16_s20 = sshll.u32 %s798_s19, 4  ;;  %s17_s20 = int_to_ptr.vmem [resolvable:$true] %s16_s20 }
  0x10   :  { %s737_s21 = scalar_lea.vmem %s17_s20, 384  ;;  %p742_p6 = scmp.lt.s32.totalorder %s17_s20, %s17_s20 }
  0x11   :  { %p738_p5 = scmp.ne.s32.totalorder %s17_s20, %s737_s21  ;;  %p743_p7 = scmp.lt.s32.totalorder %s737_s21, %s737_s21 }
  0x13   :  { %p744_p8 = por %p743_p7, %p742_p6 }
  0x15   :  { %p745_p9 = pnand %p744_p8, %p738_p5 }
  0x17   :  { %748 = shalt.err (!%p745_p9)
}
  0x18   :  { %s799_s22 = smov 128   ;;  %s800_s23 = smov 8  }
  0x19   :  { %22 = dma.hbm_to_vmem [thread:$0]  %s851_s0, 384, %s17_s20, [#allocation3], %s799_s22, %s799_s22, %s800_s23  }
  0x1a   :  { %s801_s1 = smov [#allocation7]  }
  0x1b   :  { %s40_s26 = sshll.u32 %s801_s1, 4  ;;  %s41_s26 = int_to_ptr.vmem [resolvable:$true] %s40_s26 }
  0x1c   :  { %s757_s27 = scalar_lea.vmem %s41_s26, 8192  ;;  %p762_p11 = scmp.lt.s32.totalorder %s41_s26, %s41_s26 }
  0x1d   :  { %p758_p10 = scmp.ne.s32.totalorder %s41_s26, %s757_s27  ;;  %p763_p12 = scmp.lt.s32.totalorder %s757_s27, %s757_s27 }
  0x1f   :  { %p764_p13 = por %p763_p12, %p762_p11 }
  0x21   :  { %p765_p0 = pnand %p764_p13, %p758_p10 }
  0x23   :  { %768 = shalt.err (!%p765_p0)
}
  0x24   :  { %46 = dma.hbm_to_vmem [thread:$0]  %s853_s2, 8192, %s41_s26, [#allocation6], %s799_s22, %s799_s22, %s800_s23  }
  0x25   :  { %789 = dma.done.wait [#allocation3], 384  }
  0x26   :  { %790 = vsyncadd [#allocation3], 4294966912 }
  0x27   :  { %791 = dma.done.wait [#allocation6], 16384  }
  0x28   :  { %792 = vsyncadd [#allocation6], 4294950912  ;;  %v802_v0 = vmov 0.0   ;;  %v120_v1 = vld [vmem:[#allocation5 + $0x1e8] sm:$0xff]  ;;  %v122_v2 = vld [vmem:[#allocation5 + $0x1f8] sm:$0xff]  ;;  %s803_s0 = smov [#allocation8]  }
  0x29   :  { %187 = vmatprep.mubr.f32.mxu0 %v802_v0  ;;  %270 = vmatprep.mubr.f32.mxu1 %v802_v0  ;;  %v119_v3 = vld [vmem:[#allocation5 + $0x1e0] sm:$0xff]  ;;  %v121_v4 = vld [vmem:[#allocation5 + $0x1f0] sm:$0xff]  ;;  %v116_v5 = vld [vmem:[#allocation5 + $0x1c8] sm:$0xff]  ;;  %s581_s2 = sshll.u32 %s803_s0, 4  ;;  %s582_s2 = int_to_ptr.vmem [resolvable:$true] %s581_s2 }
  0x2a   :  { %123 = vmatprep.subr.mxu0 %v120_v1  ;;  %206 = vmatprep.subr.mxu1 %v122_v2  ;;  %v118_v6 = vld [vmem:[#allocation5 + $0x1d8] sm:$0xff]  ;;  %v115_v7 = vld [vmem:[#allocation5 + $0x1c0] sm:$0xff]  ;;  %v117_v8 = vld [vmem:[#allocation5 + $0x1d0] sm:$0xff]  ;;  %s769_s30 = scalar_lea.vmem %s582_s2, 384  ;;  %p774_p2 = scmp.lt.s32.totalorder %s582_s2, %s582_s2 }
  0x2b   :  { %124 = vmatpush1.msra.mxu0 %v119_v3  ;;  %207 = vmatpush1.msra.mxu1 %v121_v4  ;;  %v112_v9 = vld [vmem:[#allocation5 + $0x1a8] sm:$0xff]  ;;  %v114_v10 = vld [vmem:[#allocation5 + $0x1b8] sm:$0xff]  ;;  %v111_v11 = vld [vmem:[#allocation5 + $0x1a0] sm:$0xff]  ;;  %p770_p1 = scmp.ne.s32.totalorder %s582_s2, %s769_s30  ;;  %p775_p3 = scmp.lt.s32.totalorder %s769_s30, %s769_s30 }
  0x2c   :  { %125 = vmatprep.subr.mxu0 %v116_v5  ;;  %208 = vmatprep.subr.mxu1 %v118_v6  ;;  %v113_v12 = vld [vmem:[#allocation5 + $0x1b0] sm:$0xff]  ;;  %v108_v13 = vld [vmem:[#allocation5 + $0x188] sm:$0xff]  ;;  %v110_v14 = vld [vmem:[#allocation5 + $0x198] sm:$0xff] }
  0x2d   :  { %126 = vmatpush1.msra.mxu0 %v115_v7  ;;  %209 = vmatpush1.msra.mxu1 %v117_v8  ;;  %v107_v15 = vld [vmem:[#allocation5 + $0x180] sm:$0xff]  ;;  %v109_v16 = vld [vmem:[#allocation5 + $0x190] sm:$0xff]  ;;  %v104_v17 = vld [vmem:[#allocation5 + $0x168] sm:$0xff]  ;;  %p776_p4 = por %p775_p3, %p774_p2 }
  0x2e   :  { %127 = vmatprep.subr.mxu0 %v112_v9  ;;  %210 = vmatprep.subr.mxu1 %v114_v10  ;;  %v106_v18 = vld [vmem:[#allocation5 + $0x178] sm:$0xff]  ;;  %v103_v19 = vld [vmem:[#allocation5 + $0x160] sm:$0xff]  ;;  %v105_v20 = vld [vmem:[#allocation5 + $0x170] sm:$0xff] }
  0x2f   :  { %128 = vmatpush1.msra.mxu0 %v111_v11  ;;  %211 = vmatpush1.msra.mxu1 %v113_v12  ;;  %v100_v21 = vld [vmem:[#allocation5 + $0x148] sm:$0xff]  ;;  %v102_v22 = vld [vmem:[#allocation5 + $0x158] sm:$0xff]  ;;  %v99_v23 = vld [vmem:[#allocation5 + $0x140] sm:$0xff]  ;;  %p777_p5 = pnand %p776_p4, %p770_p1 }
  0x30   :  { %129 = vmatprep.subr.mxu0 %v108_v13  ;;  %212 = vmatprep.subr.mxu1 %v110_v14  ;;  %v101_v24 = vld [vmem:[#allocation5 + $0x150] sm:$0xff]  ;;  %v96_v25 = vld [vmem:[#allocation5 + $0x128] sm:$0xff]  ;;  %v98_v26 = vld [vmem:[#allocation5 + $0x138] sm:$0xff] }
  0x31   :  { %130 = vmatpush1.msra.mxu0 %v107_v15  ;;  %213 = vmatpush1.msra.mxu1 %v109_v16  ;;  %v95_v27 = vld [vmem:[#allocation5 + $0x120] sm:$0xff]  ;;  %v97_v28 = vld [vmem:[#allocation5 + $0x130] sm:$0xff]  ;;  %v92_v29 = vld [vmem:[#allocation5 + $0x108] sm:$0xff] }
  0x32   :  { %131 = vmatprep.subr.mxu0 %v104_v17  ;;  %214 = vmatprep.subr.mxu1 %v106_v18  ;;  %v94_v30 = vld [vmem:[#allocation5 + $0x118] sm:$0xff]  ;;  %v91_v31 = vld [vmem:[#allocation5 + $0x100] sm:$0xff]  ;;  %v93_v32 = vld [vmem:[#allocation5 + $0x110] sm:$0xff] }
  0x33   :  { %132 = vmatpush1.msra.mxu0 %v103_v19  ;;  %215 = vmatpush1.msra.mxu1 %v105_v20  ;;  %v88_v33 = vld [vmem:[#allocation5 + $0xe8] sm:$0xff]  ;;  %v90_v34 = vld [vmem:[#allocation5 + $0xf8] sm:$0xff]  ;;  %v87_v35 = vld [vmem:[#allocation5 + $0xe0] sm:$0xff] }
  0x34   :  { %133 = vmatprep.subr.mxu0 %v100_v21  ;;  %216 = vmatprep.subr.mxu1 %v102_v22  ;;  %v89_v36 = vld [vmem:[#allocation5 + $0xf0] sm:$0xff]  ;;  %v84_v37 = vld [vmem:[#allocation5 + $0xc8] sm:$0xff]  ;;  %v86_v38 = vld [vmem:[#allocation5 + $0xd8] sm:$0xff] }
  0x35   :  { %134 = vmatpush1.msra.mxu0 %v99_v23  ;;  %217 = vmatpush1.msra.mxu1 %v101_v24  ;;  %v83_v39 = vld [vmem:[#allocation5 + $0xc0] sm:$0xff]  ;;  %v85_v40 = vld [vmem:[#allocation5 + $0xd0] sm:$0xff]  ;;  %v80_v41 = vld [vmem:[#allocation5 + $0xa8] sm:$0xff] }
  0x36   :  { %135 = vmatprep.subr.mxu0 %v96_v25  ;;  %218 = vmatprep.subr.mxu1 %v98_v26  ;;  %v82_v42 = vld [vmem:[#allocation5 + $0xb8] sm:$0xff]  ;;  %v79_v43 = vld [vmem:[#allocation5 + $0xa0] sm:$0xff]  ;;  %v81_v44 = vld [vmem:[#allocation5 + $0xb0] sm:$0xff] }
  0x37   :  { %136 = vmatpush1.msra.mxu0 %v95_v27  ;;  %219 = vmatpush1.msra.mxu1 %v97_v28  ;;  %v76_v45 = vld [vmem:[#allocation5 + $0x88] sm:$0xff]  ;;  %v78_v46 = vld [vmem:[#allocation5 + $0x98] sm:$0xff]  ;;  %v75_v47 = vld [vmem:[#allocation5 + $0x80] sm:$0xff] }
  0x38   :  { %137 = vmatprep.subr.mxu0 %v92_v29  ;;  %220 = vmatprep.subr.mxu1 %v94_v30  ;;  %v77_v48 = vld [vmem:[#allocation5 + $0x90] sm:$0xff]  ;;  %v72_v49 = vld [vmem:[#allocation5 + $0x68] sm:$0xff]  ;;  %v74_v50 = vld [vmem:[#allocation5 + $0x78] sm:$0xff] }
  0x39   :  { %138 = vmatpush1.msra.mxu0 %v91_v31  ;;  %221 = vmatpush1.msra.mxu1 %v93_v32  ;;  %v71_v51 = vld [vmem:[#allocation5 + $0x60] sm:$0xff]  ;;  %v73_v52 = vld [vmem:[#allocation5 + $0x70] sm:$0xff]  ;;  %v68_v53 = vld [vmem:[#allocation5 + $0x48] sm:$0xff] }
  0x3a   :  { %139 = vmatprep.subr.mxu0 %v88_v33  ;;  %222 = vmatprep.subr.mxu1 %v90_v34  ;;  %v70_v54 = vld [vmem:[#allocation5 + $0x58] sm:$0xff]  ;;  %v67_v55 = vld [vmem:[#allocation5 + $0x40] sm:$0xff]  ;;  %v69_v56 = vld [vmem:[#allocation5 + $0x50] sm:$0xff] }
  0x3b   :  { %140 = vmatpush1.msra.mxu0 %v87_v35  ;;  %223 = vmatpush1.msra.mxu1 %v89_v36  ;;  %v64_v57 = vld [vmem:[#allocation5 + $0x28] sm:$0xff]  ;;  %v66_v58 = vld [vmem:[#allocation5 + $0x38] sm:$0xff]  ;;  %v63_v59 = vld [vmem:[#allocation5 + $0x20] sm:$0xff] }
  0x3c   :  { %141 = vmatprep.subr.mxu0 %v84_v37  ;;  %224 = vmatprep.subr.mxu1 %v86_v38  ;;  %v65_v60 = vld [vmem:[#allocation5 + $0x30] sm:$0xff]  ;;  %v60_v61 = vld [vmem:[#allocation5 + $0x8] sm:$0xff]  ;;  %v62_v62 = vld [vmem:[#allocation5 + $0x18] sm:$0xff] }
  0x3d   :  { %142 = vmatpush1.msra.mxu0 %v83_v39  ;;  %225 = vmatpush1.msra.mxu1 %v85_v40  ;;  %v59_v63 = vld [vmem:[#allocation5] sm:$0xff]  ;;  %v61_v1 = vld [vmem:[#allocation5 + $0x10] sm:$0xff]  ;;  %v56_v2 = vld [vmem:[#allocation2] sm:$0xff] }
  0x3e   :  { %143 = vmatprep.subr.mxu0 %v80_v41  ;;  %226 = vmatprep.subr.mxu1 %v82_v42  ;;  %v380_v3 = vld [vmem:[#allocation7 + $0xf8] sm:$0xff]  ;;  %v57_v7 = vld [vmem:[#allocation2 + $0x8] sm:$0xff]  ;;  %v378_v13 = vld [vmem:[#allocation7 + $0xe8] sm:$0xff] }
  0x3f   :  { %144 = vmatpush1.msra.mxu0 %v79_v43  ;;  %227 = vmatpush1.msra.mxu1 %v81_v44  ;;  %v412_v4 = vld [vmem:[#allocation7 + $0x1f8] sm:$0xff]  ;;  %v379_v8 = vld [vmem:[#allocation7 + $0xf0] sm:$0xff]  ;;  %v410_v14 = vld [vmem:[#allocation7 + $0x1e8] sm:$0xff] }
  0x40   :  { %145 = vmatprep.subr.mxu0 %v76_v45  ;;  %228 = vmatprep.subr.mxu1 %v78_v46  ;;  %v364_v5 = vld [vmem:[#allocation7 + $0x78] sm:$0xff]  ;;  %v411_v9 = vld [vmem:[#allocation7 + $0x1f0] sm:$0xff]  ;;  %v362_v15 = vld [vmem:[#allocation7 + $0x68] sm:$0xff] }
  0x41   :  { %146 = vmatpush1.msra.mxu0 %v75_v47  ;;  %229 = vmatpush1.msra.mxu1 %v77_v48  ;;  %v396_v6 = vld [vmem:[#allocation7 + $0x178] sm:$0xff]  ;;  %v363_v10 = vld [vmem:[#allocation7 + $0x70] sm:$0xff]  ;;  %v394_v16 = vld [vmem:[#allocation7 + $0x168] sm:$0xff] }
  0x42   :  { %147 = vmatprep.subr.mxu0 %v72_v49  ;;  %230 = vmatprep.subr.mxu1 %v74_v50  ;;  %v395_v11 = vld [vmem:[#allocation7 + $0x170] sm:$0xff]  ;;  %v58_v12 = vld [vmem:[#allocation2 + $0x10] sm:$0xf]  ;;  %v377_v17 = vld [vmem:[#allocation7 + $0xe0] sm:$0xff] }
  0x43   :  { %148 = vmatpush1.msra.mxu0 %v71_v51  ;;  %231 = vmatpush1.msra.mxu1 %v73_v52  ;;  %v409_v18 = vld [vmem:[#allocation7 + $0x1e0] sm:$0xff]  ;;  %v408_v21 = vld [vmem:[#allocation7 + $0x1d8] sm:$0xff]  ;;  %v375_v24 = vld [vmem:[#allocation7 + $0xd0] sm:$0xff] }
  0x44   :  { %149 = vmatprep.subr.mxu0 %v68_v53  ;;  %232 = vmatprep.subr.mxu1 %v70_v54  ;;  %v361_v19 = vld [vmem:[#allocation7 + $0x60] sm:$0xff]  ;;  %v360_v22 = vld [vmem:[#allocation7 + $0x58] sm:$0xff]  ;;  %v407_v25 = vld [vmem:[#allocation7 + $0x1d0] sm:$0xff] }
  0x45   :  { %150 = vmatpush1.msra.mxu0 %v67_v55  ;;  %233 = vmatpush1.msra.mxu1 %v69_v56  ;;  %v393_v20 = vld [vmem:[#allocation7 + $0x160] sm:$0xff]  ;;  %v392_v23 = vld [vmem:[#allocation7 + $0x158] sm:$0xff]  ;;  %v359_v26 = vld [vmem:[#allocation7 + $0x50] sm:$0xff] }
  0x46   :  { %151 = vmatprep.subr.mxu0 %v64_v57  ;;  %234 = vmatprep.subr.mxu1 %v66_v58  ;;  %v391_v27 = vld [vmem:[#allocation7 + $0x150] sm:$0xff]  ;;  %v374_v28 = vld [vmem:[#allocation7 + $0xc8] sm:$0xff]  ;;  %v373_v32 = vld [vmem:[#allocation7 + $0xc0] sm:$0xff] }
  0x47   :  { %152 = vmatpush1.msra.mxu0 %v63_v59  ;;  %235 = vmatpush1.msra.mxu1 %v65_v60  ;;  %v406_v29 = vld [vmem:[#allocation7 + $0x1c8] sm:$0xff]  ;;  %v405_v33 = vld [vmem:[#allocation7 + $0x1c0] sm:$0xff]  ;;  %v372_v36 = vld [vmem:[#allocation7 + $0xb8] sm:$0xff] }
  0x48   :  { %153 = vmatprep.subr.mxu0 %v60_v61  ;;  %236 = vmatprep.subr.mxu1 %v62_v62  ;;  %v358_v30 = vld [vmem:[#allocation7 + $0x48] sm:$0xff]  ;;  %v357_v34 = vld [vmem:[#allocation7 + $0x40] sm:$0xff]  ;;  %v404_v37 = vld [vmem:[#allocation7 + $0x1b8] sm:$0xff] }
  0x49   :  { %154 = vmatpush1.msra.mxu0 %v59_v63  ;;  %237 = vmatpush1.msra.mxu1 %v61_v1  ;;  %v390_v31 = vld [vmem:[#allocation7 + $0x148] sm:$0xff]  ;;  %v389_v35 = vld [vmem:[#allocation7 + $0x140] sm:$0xff]  ;;  %v356_v38 = vld [vmem:[#allocation7 + $0x38] sm:$0xff] }
  0x4a   :  { %188 = vmatmul.mubr.f32.vlgmr.msra.gmra.mxu0 %v56_v2  ;;  %271 = vmatmul.mubr.f32.vlgmr.msra.gmra.mxu1 %v56_v2  ;;  %v388_v39 = vld [vmem:[#allocation7 + $0x138] sm:$0xff]  ;;  %v371_v40 = vld [vmem:[#allocation7 + $0xb0] sm:$0xff]  ;;  %v370_v44 = vld [vmem:[#allocation7 + $0xa8] sm:$0xff] }
  0x4b   :  { %193 = vmatprep.mubr.f32.mxu0 %v802_v0  ;;  %276 = vmatprep.mubr.f32.mxu1 %v802_v0  ;;  %v403_v41 = vld [vmem:[#allocation7 + $0x1b0] sm:$0xff]  ;;  %v402_v45 = vld [vmem:[#allocation7 + $0x1a8] sm:$0xff]  ;;  %v369_v48 = vld [vmem:[#allocation7 + $0xa0] sm:$0xff] }
  0x4c   :  { %594 = vmatprep.subr.mxu0 %v380_v3  ;;  %635 = vmatprep.subr.mxu1 %v412_v4  ;;  %v355_v42 = vld [vmem:[#allocation7 + $0x30] sm:$0xff]  ;;  %v354_v46 = vld [vmem:[#allocation7 + $0x28] sm:$0xff]  ;;  %v401_v49 = vld [vmem:[#allocation7 + $0x1a0] sm:$0xff] }
  0x4d   :  { %595 = vmatpush3.msra.mxu0 %v364_v5  ;;  %636 = vmatpush3.msra.mxu1 %v396_v6  ;;  %v387_v43 = vld [vmem:[#allocation7 + $0x130] sm:$0xff]  ;;  %v386_v47 = vld [vmem:[#allocation7 + $0x128] sm:$0xff]  ;;  %v353_v50 = vld [vmem:[#allocation7 + $0x20] sm:$0xff] }
  0x4e   :  { %194 = vmatmul.mubr.f32.gmra.mxu0 %v57_v7  ;;  %277 = vmatmul.mubr.f32.gmra.mxu1 %v57_v7  ;;  %v385_v51 = vld [vmem:[#allocation7 + $0x120] sm:$0xff]  ;;  %v368_v52 = vld [vmem:[#allocation7 + $0x98] sm:$0xff]  ;;  %v367_v56 = vld [vmem:[#allocation7 + $0x90] sm:$0xff] }
  0x4f   :  { %199 = vmatprep.mubr.f32.mxu0 %v802_v0  ;;  %282 = vmatprep.mubr.f32.mxu1 %v802_v0  ;;  %v376_v0 = vld [vmem:[#allocation7 + $0xd8] sm:$0xff]  ;;  %v399_v57 = vld [vmem:[#allocation7 + $0x190] sm:$0xff]  ;;  %v366_v60 = vld [vmem:[#allocation7 + $0x88] sm:$0xff] }
  0x50   :  { %596 = vmatprep.subr.mxu0 %v379_v8  ;;  %637 = vmatprep.subr.mxu1 %v411_v9  ;;  %v400_v53 = vld [vmem:[#allocation7 + $0x198] sm:$0xff]  ;;  %v351_v58 = vld [vmem:[#allocation7 + $0x10] sm:$0xff]  ;;  %v398_v61 = vld [vmem:[#allocation7 + $0x188] sm:$0xff] }
  0x51   :  { %597 = vmatpush3.msra.mxu0 %v363_v10  ;;  %638 = vmatpush3.msra.mxu1 %v395_v11  ;;  %v352_v54 = vld [vmem:[#allocation7 + $0x18] sm:$0xff]  ;;  %v383_v59 = vld [vmem:[#allocation7 + $0x110] sm:$0xff]  ;;  %v350_v62 = vld [vmem:[#allocation7 + $0x8] sm:$0xff] }
  0x52   :  { %200 = vmatmul.mubr.f32.gmra.mxu0 %v58_v12  ;;  %283 = vmatmul.mubr.f32.gmra.mxu1 %v58_v12  ;;  %v384_v55 = vld [vmem:[#allocation7 + $0x118] sm:$0xff]  ;;  %v382_v63 = vld [vmem:[#allocation7 + $0x108] sm:$0xff]  ;;  %v365_v1 = vld [vmem:[#allocation7 + $0x80] sm:$0xff] }
  0x53   :  { %598 = vmatprep.subr.mxu0 %v378_v13  ;;  %639 = vmatprep.subr.mxu1 %v410_v14  ;;  %v397_v2 = vld [vmem:[#allocation7 + $0x180] sm:$0xff] }
  0x54   :  { %599 = vmatpush3.msra.mxu0 %v362_v15  ;;  %640 = vmatpush3.msra.mxu1 %v394_v16  ;;  %v349_v3 = vld [vmem:[#allocation7] sm:$0xff] }
  0x55   :  { %600 = vmatprep.subr.mxu0 %v377_v17  ;;  %641 = vmatprep.subr.mxu1 %v409_v18  ;;  %v381_v4 = vld [vmem:[#allocation7 + $0x100] sm:$0xff] }
  0x56   :  { %601 = vmatpush3.msra.mxu0 %v361_v19  ;;  %642 = vmatpush3.msra.mxu1 %v393_v20 }
  0x57   :  { %602 = vmatprep.subr.mxu0 %v376_v0  ;;  %643 = vmatprep.subr.mxu1 %v408_v21 }
  0x58   :  { %603 = vmatpush3.msra.mxu0 %v360_v22  ;;  %644 = vmatpush3.msra.mxu1 %v392_v23 }
  0x59   :  { %604 = vmatprep.subr.mxu0 %v375_v24  ;;  %645 = vmatprep.subr.mxu1 %v407_v25 }
  0x5a   :  { %605 = vmatpush3.msra.mxu0 %v359_v26  ;;  %646 = vmatpush3.msra.mxu1 %v391_v27 }
  0x5b   :  { %606 = vmatprep.subr.mxu0 %v374_v28  ;;  %647 = vmatprep.subr.mxu1 %v406_v29 }
  0x5c   :  { %607 = vmatpush3.msra.mxu0 %v358_v30  ;;  %648 = vmatpush3.msra.mxu1 %v390_v31 }
  0x5d   :  { %608 = vmatprep.subr.mxu0 %v373_v32  ;;  %649 = vmatprep.subr.mxu1 %v405_v33 }
  0x5e   :  { %609 = vmatpush3.msra.mxu0 %v357_v34  ;;  %650 = vmatpush3.msra.mxu1 %v389_v35 }
  0x5f   :  { %610 = vmatprep.subr.mxu0 %v372_v36  ;;  %651 = vmatprep.subr.mxu1 %v404_v37 }
  0x60   :  { %611 = vmatpush3.msra.mxu0 %v356_v38  ;;  %652 = vmatpush3.msra.mxu1 %v388_v39 }
  0x61   :  { %612 = vmatprep.subr.mxu0 %v371_v40  ;;  %653 = vmatprep.subr.mxu1 %v403_v41 }
  0x62   :  { %613 = vmatpush3.msra.mxu0 %v355_v42  ;;  %654 = vmatpush3.msra.mxu1 %v387_v43 }
  0x63   :  { %614 = vmatprep.subr.mxu0 %v370_v44  ;;  %655 = vmatprep.subr.mxu1 %v402_v45 }
  0x64   :  { %615 = vmatpush3.msra.mxu0 %v354_v46  ;;  %656 = vmatpush3.msra.mxu1 %v386_v47 }
  0x65   :  { %616 = vmatprep.subr.mxu0 %v369_v48  ;;  %657 = vmatprep.subr.mxu1 %v401_v49 }
  0x66   :  { %617 = vmatpush3.msra.mxu0 %v353_v50  ;;  %658 = vmatpush3.msra.mxu1 %v385_v51 }
  0x67   :  { %618 = vmatprep.subr.mxu0 %v368_v52  ;;  %659 = vmatprep.subr.mxu1 %v400_v53 }
  0x68   :  { %619 = vmatpush3.msra.mxu0 %v352_v54  ;;  %660 = vmatpush3.msra.mxu1 %v384_v55 }
  0x69   :  { %620 = vmatprep.subr.mxu0 %v367_v56  ;;  %661 = vmatprep.subr.mxu1 %v399_v57 }
  0x6a   :  { %621 = vmatpush3.msra.mxu0 %v351_v58  ;;  %662 = vmatpush3.msra.mxu1 %v383_v59 }
  0x6b   :  { %622 = vmatprep.subr.mxu0 %v366_v60  ;;  %663 = vmatprep.subr.mxu1 %v398_v61 }
  0x6c   :  { %623 = vmatpush3.msra.mxu0 %v350_v62  ;;  %664 = vmatpush3.msra.mxu1 %v382_v63 }
  0x6d   :  { %624 = vmatprep.subr.mxu0 %v365_v1  ;;  %665 = vmatprep.subr.mxu1 %v397_v2 }
  0x6e   :  { %625 = vmatpush3.msra.mxu0 %v349_v3  ;;  %666 = vmatpush3.msra.mxu1 %v381_v4 }
 0x10a   :  { %v189_v5 = vpop.f32.mrf.mxu0  ;;  %v272_v6 = vpop.f32.mrf.mxu1 }
 0x10b   :  { %v301_v7 = vmul.f32 0.70710677, %v189_v5  ;;  %v303_v8 = vmul.f32 0.70710677, %v272_v6  ;;  %v289_v37 = vmul.f32 0.5, %v189_v5  ;;  %v291_v41 = vmul.f32 0.5, %v272_v6 }
 0x10c   :  { %v191_v9 = vpop.f32.mrf.mxu0  ;;  %v274_v10 = vpop.f32.mrf.mxu1 }
 0x10d   :  { %685 = verf.f32 %v301_v7  ;;  %v302_v11 = vmul.f32 0.70710677, %v191_v9  ;;  %v304_v12 = vmul.f32 0.70710677, %v274_v10  ;;  %v290_v34 = vmul.f32 0.5, %v191_v9 }
 0x10e   :  { %687 = verf.f32 %v303_v8  ;;  %v195_v13 = vpop.f32.mrf.mxu0  ;;  %v278_v14 = vpop.f32.mrf.mxu1  ;;  %v292_v38 = vmul.f32 0.5, %v274_v10 }
 0x10f   :  { %689 = verf.f32 %v302_v11  ;;  %v305_v15 = vmul.f32 0.70710677, %v195_v13  ;;  %v307_v16 = vmul.f32 0.70710677, %v278_v14  ;;  %v293_v53 = vmul.f32 0.5, %v195_v13 }
 0x110   :  { %691 = verf.f32 %v304_v12  ;;  %v197_v17 = vpop.f32.mrf.mxu0  ;;  %v280_v18 = vpop.f32.mrf.mxu1  ;;  %v295_v57 = vmul.f32 0.5, %v278_v14 }
 0x111   :  { %693 = verf.f32 %v305_v15  ;;  %v306_v19 = vmul.f32 0.70710677, %v197_v17  ;;  %v308_v20 = vmul.f32 0.70710677, %v280_v18  ;;  %v294_v50 = vmul.f32 0.5, %v197_v17 }
 0x112   :  { %695 = verf.f32 %v307_v16  ;;  %v201_v0 = vpop.f32.mrf.mxu0  ;;  %v284_v21 = vpop.f32.mrf.mxu1  ;;  %v296_v54 = vmul.f32 0.5, %v280_v18 }
 0x113   :  { %697 = verf.f32 %v306_v19  ;;  %v309_v22 = vmul.f32 0.70710677, %v201_v0  ;;  %v311_v23 = vmul.f32 0.70710677, %v284_v21  ;;  %v297_v5 = vmul.f32 0.5, %v201_v0 }
 0x114   :  { %699 = verf.f32 %v308_v20  ;;  %v203_v24 = vpop.f32.mrf.mxu0  ;;  %v286_v25 = vpop.f32.mrf.mxu1  ;;  %v299_v8 = vmul.f32 0.5, %v284_v21 }
 0x115   :  { %701 = verf.f32 %v309_v22  ;;  %v310_v26 = vmul.f32 0.70710677, %v203_v24  ;;  %v312_v27 = vmul.f32 0.70710677, %v286_v25  ;;  %v298_v3 = vmul.f32 0.5, %v203_v24 }
 0x116   :  { %703 = verf.f32 %v311_v23  ;;  %v300_v6 = vmul.f32 0.5, %v286_v25 }
 0x117   :  { %705 = verf.f32 %v310_v26 }
 0x118   :  { %707 = verf.f32 %v312_v27 }
 0x11a   :  { %v686_v28 = vpop.eup %685 }
 0x11b   :  { %v688_v29 = vpop.eup %687  ;;  %v325_v31 = vadd.f32 1.0, %v686_v28 }
 0x11c   :  { %v690_v30 = vpop.eup %689  ;;  %v327_v33 = vadd.f32 1.0, %v688_v29 }
 0x11d   :  { %v692_v32 = vpop.eup %691  ;;  %v326_v35 = vadd.f32 1.0, %v690_v30  ;;  %v337_v44 = vmul.f32 %v325_v31, %v289_v37 }
 0x11e   :  { %v694_v36 = vpop.eup %693  ;;  %v328_v39 = vadd.f32 1.0, %v692_v32  ;;  %v339_v48 = vmul.f32 %v327_v33, %v291_v41 }
 0x11f   :  { %v696_v40 = vpop.eup %695  ;;  %v338_v42 = vmul.f32 %v326_v35, %v290_v34  ;;  %v329_v46 = vadd.f32 1.0, %v694_v36 }
 0x120   :  { %v698_v43 = vpop.eup %697  ;;  %v340_v45 = vmul.f32 %v328_v39, %v292_v38  ;;  %v331_v49 = vadd.f32 1.0, %v696_v40 }
 0x121   :  { %v700_v47 = vpop.eup %699  ;;  %v330_v51 = vadd.f32 1.0, %v698_v43  ;;  %477 = vmatprep.mubr.f32.mxu0 %v338_v42  ;;  %v341_v60 = vmul.f32 %v329_v46, %v293_v53 }
 0x122   :  { %v702_v52 = vpop.eup %701  ;;  %v332_v55 = vadd.f32 1.0, %v700_v47  ;;  %557 = vmatprep.mubr.f32.mxu1 %v340_v45  ;;  %478 = vmatmul.mubr.f32.vlgmr.msra.gmra.mxu0 %v337_v44  ;;  %v343_v1 = vmul.f32 %v331_v49, %v295_v57 }
 0x123   :  { %v704_v56 = vpop.eup %703  ;;  %v342_v58 = vmul.f32 %v330_v51, %v294_v50  ;;  %558 = vmatmul.mubr.f32.vlgmr.msra.gmra.mxu1 %v339_v48  ;;  %v333_v62 = vadd.f32 1.0, %v702_v52 }
 0x124   :  { %v706_v59 = vpop.eup %705  ;;  %v344_v61 = vmul.f32 %v332_v55, %v296_v54  ;;  %v335_v2 = vadd.f32 1.0, %v704_v56 }
 0x125   :  { %v708_v63 = vpop.eup %707  ;;  %v334_v4 = vadd.f32 1.0, %v706_v59  ;;  %482 = vmatprep.mubr.f32.mxu0 %v342_v58  ;;  %v345_v10 = vmul.f32 %v333_v62, %v297_v5 }
 0x126   :  { %v336_v7 = vadd.f32 1.0, %v708_v63  ;;  %562 = vmatprep.mubr.f32.mxu1 %v344_v61  ;;  %483 = vmatmul.mubr.f32.gmra.mxu0 %v341_v60  ;;  %v347_v12 = vmul.f32 %v335_v2, %v299_v8 }
 0x127   :  { %v346_v9 = vmul.f32 %v334_v4, %v298_v3  ;;  %563 = vmatmul.mubr.f32.gmra.mxu1 %v343_v1 }
 0x128   :  { %v348_v11 = vmul.f32 %v336_v7, %v300_v6 }
 0x129   :  { %487 = vmatprep.mubr.f32.mxu0 %v346_v9 }
 0x12a   :  { %567 = vmatprep.mubr.f32.mxu1 %v348_v11  ;;  %488 = vmatmul.mubr.f32.gmra.mxu0 %v345_v10 }
 0x12b   :  { %568 = vmatmul.mubr.f32.gmra.mxu1 %v347_v12 }
 0x1e2   :  { %v626_v13 = vpop.f32.mrf.mxu0 }
 0x1e3   :  { %v667_v14 = vpop.f32.mrf.mxu1 }
 0x1e4   :  { %v627_v15 = vpop.f32.mrf.mxu0 }
 0x1e5   :  { %v628_v16 = vadd.f32 %v627_v15, %v626_v13  ;;  %v668_v17 = vpop.f32.mrf.mxu1 }
 0x1e6   :  { %v669_v18 = vadd.f32 %v668_v17, %v667_v14  ;;  %v629_v19 = vpop.f32.mrf.mxu0 }
 0x1e7   :  { %v670_v20 = vpop.f32.mrf.mxu1 }
 0x1e8   :  { %v560_v0 = vadd.f32 %v669_v18, %v628_v16  ;;  %v630_v22 = vpop.f32.mrf.mxu0 }
 0x1e9   :  { %v631_v21 = vadd.f32 %v630_v22, %v629_v19  ;;  %v671_v23 = vpop.f32.mrf.mxu1 }
 0x1ea   :  { %573 = vst [vmem:[#allocation8] sm:$0xff] %v560_v0  ;;  %v672_v24 = vadd.f32 %v671_v23, %v670_v20  ;;  %v632_v25 = vpop.f32.mrf.mxu0 }
 0x1eb   :  { %v673_v26 = vpop.f32.mrf.mxu1 }
 0x1ec   :  { %v565_v27 = vadd.f32 %v672_v24, %v631_v21  ;;  %v633_v28 = vpop.f32.mrf.mxu0 }
 0x1ed   :  { %v634_v29 = vadd.f32 %v633_v28, %v632_v25  ;;  %v674_v30 = vpop.f32.mrf.mxu1 }
 0x1ee   :  { %574 = vst [vmem:[#allocation8 + $0x8] sm:$0xff] %v565_v27  ;;  %v675_v31 = vadd.f32 %v674_v30, %v673_v26 }
 0x1f0   :  { %v570_v32 = vadd.f32 %v675_v31, %v634_v29 }
 0x1f2   :  { %575 = vst [vmem:[#allocation8 + $0x10] sm:$0xf] %v570_v32 }
 0x1f3   :  { %780 = shalt.err (!%p777_p5)
}
 0x1f4   :  { %587 = dma.vmem_to_hbm [thread:$0]  %s582_s2, 384, %s854_s3, [#allocation4], %s799_s22, %s799_s22, %s800_s23  }
 0x1f5   :  { %793 = dma.done.wait [#allocation4], 384  }
 0x1f6   :  { %794 = vsyncadd [#allocation4], 4294966912 }
 0x1f7   :  { %591 = vsyncpa [#allocation3], 1 }
 0x1f8   :  { %592 = vsyncpa [#allocation6], 1 }
 0x1f9   :  { %593 = vsyncpa [#allocation4], 1 }

</bundles_post_ra>
